<compile_context>
chip_gen: v5e
topology: v5e:2x2
jax: 0.10.0
libtpu: 0.0.40
codegen_flags: <defaults>
</compile_context>

<pallas_src>
import numpy as np
import jax
import jax.numpy as jnp
from jax import lax
from jax.experimental import pallas as pl
from jax.experimental.pallas import tpu as pltpu


def _round_up(x, m):
    return ((x + m - 1) // m) * m


class VoxelizationPallas:
    """JAX/Pallas port of mmdet3d `Voxelization` forward (hard voxelization)."""

    def __init__(self, voxel_size, point_cloud_range, max_num_points,
                 max_voxels, deterministic=True, pass2_tile=2048):
        self.voxel_size = [float(v) for v in voxel_size]
        self.point_cloud_range = [float(v) for v in point_cloud_range]
        self.max_num_points = int(max_num_points)
        self.max_voxels = max_voxels          # (train, test) like the torch module
        self.deterministic = deterministic
        self.pass2_tile = int(pass2_tile)     # points per pass-2 grid step (mult. of 8)
        pcr = np.asarray(self.point_cloud_range, np.float32)
        vs = np.asarray(self.voxel_size, np.float32)
        grid_size = np.round((pcr[3:] - pcr[:3]) / vs).astype(np.int64)
        self.grid_size = grid_size            # (gx, gy, gz)
        self.pcd_shape = [1, int(grid_size[1]), int(grid_size[0])]
        self.training = True

        G = int(grid_size[0]) * int(grid_size[1]) * int(grid_size[2])
        assert G < 2 ** 31, "flat voxel id would overflow int32 for this grid"
        # TODO(synk): the SMEM dedup map of size G=gx*gy*gz (and the SMEM-prefetched
        # flat-id array / SMEM coors output) does not scale to production grids
        # (~1e7+ voxels, N~3e5 points); a hash/sort-based dedup plus streaming the
        # flat ids from HBM (memory_space=pl.ANY) is required there.

    # ----- wrapper -------------------------------------------------------------
    def forward(self, points):
        max_voxels = int(self.max_voxels[0] if self.training else self.max_voxels[1])
        N, ndim = points.shape
        gx = int(self.grid_size[0])
        gy = int(self.grid_size[1])
        gz = int(self.grid_size[2])
        G = gx * gy * gz
        gxy = gx * gy
        max_points = self.max_num_points
        W = max_points * ndim                 # logical voxel-row width
        W_pad = _round_up(W, 128)             # lane-dense (unmasked full-row stores)
        pcr = self.point_cloud_range
        vs = self.voxel_size

        # ---- tile / pad N so it sits cleanly on the 128-lane axis ----
        if N > 2048:
            n_pad = _round_up(N, 2048)
            tn1 = 2048                        # pass-1 lane tile (>=512 for v5e roofline)
        else:
            n_pad = _round_up(max(N, 1), 128)
            tn1 = n_pad
        tn2 = min(self.pass2_tile, n_pad)     # pass-2 point tile (bounds VMEM, v7x-safe)
        if tn2 % 8 != 0 or n_pad % tn2 != 0:
            tn2 = n_pad

        pts_pad = jnp.pad(points.astype(jnp.float32), ((0, n_pad - N), (0, 0)))
        # Layout plumbing only: xyz transposed so N is lane-dense for pass 1.
        xyz_t = jnp.transpose(pts_pad[:, :3])               # (3, n_pad)

        # ---------------- pass 1: flat voxel ids (vector, lane-dense) ----------
        def flat_id_kernel(xyz_ref, out_ref):
            lane = lax.broadcasted_iota(jnp.int32, (1, tn1), 1)
            gidx = pl.program_id(0) * tn1 + lane             # global point index
            # Exact divide kept on purpose: reciprocal-mul can flip boundary bins
            # relative to the torch/CPU reference which divides.
            cx = jnp.floor((xyz_ref[0:1, :] - pcr[0]) / vs[0]).astype(jnp.int32)
            cy = jnp.floor((xyz_ref[1:2, :] - pcr[1]) / vs[1]).astype(jnp.int32)
            cz = jnp.floor((xyz_ref[2:3, :] - pcr[2]) / vs[2]).astype(jnp.int32)
            valid = ((gidx < N) & (cx >= 0) & (cx < gx) & (cy >= 0) & (cy < gy)
                     & (cz >= 0) & (cz < gz))
            out_ref[...] = jnp.where(valid, cz * (gy * gx) + cy * gx + cx,
                                     jnp.int32(-1))

        flat2d = pl.pallas_call(
            flat_id_kernel,
            out_shape=jax.ShapeDtypeStruct((1, n_pad), jnp.int32),
            grid=(n_pad // tn1,),
            in_specs=[pl.BlockSpec((3, tn1), lambda i: (0, i))],
            out_specs=pl.BlockSpec((1, tn1), lambda i: (0, i)),
            compiler_params=pltpu.CompilerParams(
                dimension_semantics=("parallel",),
                vmem_limit_bytes=32 * 1024 * 1024),
        )(xyz_t)
        # Only the compact 1-D flat-id array is handed to pass 2 (SMEM prefetch).
        flat_ids = flat2d.reshape(n_pad)

        # ---------------- pass 2: tiled sequential dedup + scatter -------------
        def scatter_kernel(flat_ref, points_ref, voxels_ref, coors_ref,
                           npts_ref, nvox_ref, rep_ref, coor_map_ref):
            tile = pl.program_id(0)
            base = tile * tn2

            # ---- one-time init (grid step 0 only): counter + dedup-map clear.
            # Clearing is confined to step 0 so later tiles never erase earlier
            # allocations; O(N) scalar stores, unrolled x8 on the 2-wide scalar slot.
            @pl.when(tile == 0)
            def _():
                nvox_ref[0] = jnp.int32(0)

                def clear_body(i, c):
                    coor_map_ref[jnp.maximum(flat_ref[i], 0)] = jnp.int32(-1)
                    return c
                lax.fori_loop(0, n_pad, clear_body, jnp.int32(0), unroll=8)

            # ---- per-tile vector phase: replicate each point across all slot
            # lanes into VMEM scratch (static lane slices only). This amortizes
            # the replication off the scalar chain; the per-point path below is
            # then one load + one masked store.
            pts = points_ref[...]                              # (tn2, ndim)
            for s in range(max_points):                        # static python loop
                rep_ref[:, s * ndim:(s + 1) * ndim] = pts

            # Hoisted loop invariants (JAX does not CSE broadcasts in loops).
            slot_of_lane = lax.broadcasted_iota(jnp.int32, (1, W_pad), 1) // ndim
            zero_row = jnp.zeros((1, W_pad), jnp.float32)

            # Voxel count carried in the loop; SMEM touched once per tile.
            nv0 = nvox_ref[0]

            # ---- deterministic point-order scatter (matches hard_voxelize CPU).
            def body(local_i, nv):
                flat = flat_ref[base + local_i]
                valid = flat >= 0
                vidx = coor_map_ref[jnp.maximum(flat, 0)]
                can_new = valid & (vidx < jnp.int32(0)) & (nv < max_voxels)
                vidx2 = jnp.where(can_new, nv, vidx)
                do_append = valid & (vidx2 >= jnp.int32(0))

                @pl.when(can_new)
                def _():
                    coor_map_ref[flat] = nv
                    npts_ref[nv] = jnp.int32(0)
                    # Decode z/y/x from the flat id (rare branch only).
                    cz = flat // gxy
                    rem = flat - cz * gxy
                    cy = rem // gx
                    cx = rem - cy * gx
                    coors_ref[3 * nv + 0] = cz
                    coors_ref[3 * nv + 1] = cy
                    coors_ref[3 * nv + 2] = cx
                    # Zero only this voxel's payload row; W_pad is a multiple of
                    # 128 so this is an unmasked full-width store.
                    voxels_ref[pl.ds(nv, 1), :] = zero_row

                @pl.when(do_append)
                def _():
                    cnt = npts_ref[vidx2]

                    @pl.when(cnt < max_points)
                    def _():
                        # Single masked store: no read-modify-write of the row.
                        pltpu.store(voxels_ref.at[pl.ds(vidx2, 1), :],
                                    rep_ref[pl.ds(local_i, 1), :],
                                    mask=(slot_of_lane == cnt))
                        npts_ref[vidx2] = cnt + jnp.int32(1)

                return nv + can_new.astype(jnp.int32)

            nv_final = lax.fori_loop(0, tn2, body, nv0, unroll=2)
            nvox_ref[0] = nv_final

        # TODO(synk): MXU one-hot payload scatter (dedup/payload phase split) and a
        # per-voxel-range partition across v7x's two TensorCores are not implemented;
        # the dedup remains a single sequential scalar loop.
        grid_spec = pltpu.PrefetchScalarGridSpec(
            num_scalar_prefetch=1,
            grid=(n_pad // tn2,),
            in_specs=[pl.BlockSpec((tn2, ndim), lambda i, f: (i, 0))],
            out_specs=[
                pl.BlockSpec((max_voxels, W_pad), lambda i, f: (0, 0)),   # voxels (VMEM acc.)
                pl.BlockSpec(memory_space=pltpu.MemorySpace.SMEM),        # coors (flat 1-D)
                pl.BlockSpec(memory_space=pltpu.MemorySpace.SMEM),        # num_points
                pl.BlockSpec(memory_space=pltpu.MemorySpace.SMEM),        # voxel_num
            ],
            scratch_shapes=[
                pltpu.VMEM((tn2, W_pad), jnp.float32),   # per-tile slot-replicated points
                pltpu.SMEM((G,), jnp.int32),             # flat id -> voxel idx
            ],
        )

        voxels_pad, coors_flat, num_points, voxel_num = pl.pallas_call(
            scatter_kernel,
            grid_spec=grid_spec,
            out_shape=(
                jax.ShapeDtypeStruct((max_voxels, W_pad), jnp.float32),
                jax.ShapeDtypeStruct((3 * max_voxels,), jnp.int32),
                jax.ShapeDtypeStruct((max_voxels,), jnp.int32),
                jax.ShapeDtypeStruct((1,), jnp.int32),
            ),
            compiler_params=pltpu.CompilerParams(
                dimension_semantics=("arbitrary",),
                vmem_limit_bytes=32 * 1024 * 1024),
        )(flat_ids, pts_pad)

        voxels_flat = voxels_pad[:, :W] if W != W_pad else voxels_pad
        voxels = voxels_flat.reshape(max_voxels, max_points, ndim)
        coors = coors_flat.reshape(max_voxels, 3)
        # TODO(synk): dynamic output shapes (voxels[:voxel_num]) have no JAX
        # equivalent; return padded arrays + count and slice host-side. Rows
        # >= voxel_num are undefined (the torch op never exposes them).
        return voxels, coors, num_points, voxel_num[0]

    __call__ = forward


# ---------------- pure python/numpy reference (mirrors hard_voxelize CPU) -----
def reference_voxelize(points_np, voxel_size, pc_range, max_points, max_voxels):
    vs = np.asarray(voxel_size, np.float32)
    rng = np.asarray(pc_range, np.float32)
    gsz = np.round((rng[3:] - rng[:3]) / vs).astype(np.int64)
    coor_map = {}
    ndim = points_np.shape[1]
    voxels = np.zeros((max_voxels, max_points, ndim), np.float32)
    coors = np.zeros((max_voxels, 3), np.int32)
    npts = np.zeros((max_voxels,), np.int32)
    nv = 0
    for i in range(points_np.shape[0]):
        c = np.floor((points_np[i, :3] - rng[:3]) / vs).astype(np.int64)
        if np.any(c < 0) or np.any(c >= gsz):
            continue
        key = (int(c[2]), int(c[1]), int(c[0]))
        if key in coor_map:
            v = coor_map[key]
        else:
            if nv >= max_voxels:
                continue
            v = nv
            coor_map[key] = v
            coors[v] = [c[2], c[1], c[0]]
            nv += 1
        if npts[v] < max_points:
            voxels[v, npts[v]] = points_np[i]
            npts[v] += 1
    return voxels[:nv], coors[:nv], npts[:nv], nv


if __name__ == "__main__":
    key = jax.random.PRNGKey(0)
    k1, k2, k3 = jax.random.split(key, 3)

    N, C = 100, 4
    voxel_size = [0.5, 0.5, 0.5]
    pc_range = [0.0, 0.0, 0.0, 4.0, 4.0, 2.0]
    max_num_points = 8
    max_voxels = (32, 32)

    xy = jax.random.uniform(k1, (N, 2), minval=-0.25, maxval=4.25)
    z = jax.random.uniform(k2, (N, 1), minval=-0.1, maxval=2.1)
    feat = jax.random.uniform(k3, (N, 1))
    points = jnp.concatenate([xy, z, feat], axis=1).astype(jnp.float32)

    # pass2_tile=64 gives a 2-step pass-2 grid at this size, exercising the
    # tiled accumulator / cross-tile dedup path.
    vox_layer = VoxelizationPallas(voxel_size, pc_range, max_num_points,
                                   max_voxels, pass2_tile=64)
    voxels, coors, num_points, voxel_num = vox_layer(points)
    jax.block_until_ready((voxels, coors, num_points, voxel_num))

    nv = int(voxel_num)
    voxels_np = np.asarray(voxels)[:nv]
    coors_np = np.asarray(coors)[:nv]
    npts_np = np.asarray(num_points)[:nv]

    r_vox, r_coors, r_npts, r_nv = reference_voxelize(
        np.asarray(points), voxel_size, pc_range, max_num_points, max_voxels[0])

    assert nv == r_nv, (nv, r_nv)
    assert np.array_equal(coors_np, r_coors)
    assert np.array_equal(npts_np, r_npts)
    assert np.array_equal(voxels_np, r_vox)

    print("KERNEL_OK")
</pallas_src>

<mosaic_0001>
module attributes {stable_mosaic.version = 11 : i64} {
  func.func @flat_id_kernel(%arg0: i32, %arg1: memref<3x128xf32, #tpu.memory_space<vmem>>, %arg2: memref<1x128xi32, #tpu.memory_space<vmem>>) attributes {dimension_semantics = [#tpu.dimension_semantics<parallel>], iteration_bounds = array<i64: 1>, scalar_prefetch = 0 : i64, scratch_operands = 0 : i64, tpu.core_type = #tpu.core_type<tc>, window_params = [{transform_indices = @transform_0, window_bounds = array<i64: 3, 128>}, {transform_indices = @transform_1, window_bounds = array<i64: 1, 128>}]} {
    %0 = tpu.iota {dimensions = array<i32: 1>} : vector<1x128xi32>
    %c128_i32 = arith.constant 128 : i32
    %1 = arith.muli %arg0, %c128_i32 : i32
    %2 = vector.broadcast %1 : i32 to vector<1x128xi32>
    %3 = arith.addi %2, %0 : vector<1x128xi32>
    %c0 = arith.constant 0 : index
    %c0_0 = arith.constant 0 : index
    %4 = vector.load %arg1[%c0, %c0_0] : memref<3x128xf32, #tpu.memory_space<vmem>>, vector<1x128xf32>
    %cst = arith.constant 0.000000e+00 : f32
    %5 = vector.broadcast %cst : f32 to vector<1x128xf32>
    %6 = arith.subf %4, %5 : vector<1x128xf32>
    %cst_1 = arith.constant 5.000000e-01 : f32
    %7 = vector.broadcast %cst_1 : f32 to vector<1x128xf32>
    %8 = arith.divf %6, %7 : vector<1x128xf32>
    %9 = math.floor %8 : vector<1x128xf32>
    %10 = arith.fptosi %9 : vector<1x128xf32> to vector<1x128xi32>
    %c1 = arith.constant 1 : index
    %c0_2 = arith.constant 0 : index
    %11 = vector.load %arg1[%c1, %c0_2] : memref<3x128xf32, #tpu.memory_space<vmem>>, vector<1x128xf32>
    %cst_3 = arith.constant 0.000000e+00 : f32
    %12 = vector.broadcast %cst_3 : f32 to vector<1x128xf32>
    %13 = arith.subf %11, %12 : vector<1x128xf32>
    %cst_4 = arith.constant 5.000000e-01 : f32
    %14 = vector.broadcast %cst_4 : f32 to vector<1x128xf32>
    %15 = arith.divf %13, %14 : vector<1x128xf32>
    %16 = math.floor %15 : vector<1x128xf32>
    %17 = arith.fptosi %16 : vector<1x128xf32> to vector<1x128xi32>
    %c2 = arith.constant 2 : index
    %c0_5 = arith.constant 0 : index
    %18 = vector.load %arg1[%c2, %c0_5] : memref<3x128xf32, #tpu.memory_space<vmem>>, vector<1x128xf32>
    %cst_6 = arith.constant 0.000000e+00 : f32
    %19 = vector.broadcast %cst_6 : f32 to vector<1x128xf32>
    %20 = arith.subf %18, %19 : vector<1x128xf32>
    %cst_7 = arith.constant 5.000000e-01 : f32
    %21 = vector.broadcast %cst_7 : f32 to vector<1x128xf32>
    %22 = arith.divf %20, %21 : vector<1x128xf32>
    %23 = math.floor %22 : vector<1x128xf32>
    %24 = arith.fptosi %23 : vector<1x128xf32> to vector<1x128xi32>
    %c100_i32 = arith.constant 100 : i32
    %25 = vector.broadcast %c100_i32 : i32 to vector<1x128xi32>
    %26 = arith.cmpi slt, %3, %25 : vector<1x128xi32>
    %c0_i32 = arith.constant 0 : i32
    %27 = vector.broadcast %c0_i32 : i32 to vector<1x128xi32>
    %28 = arith.cmpi sge, %10, %27 : vector<1x128xi32>
    %29 = arith.andi %26, %28 : vector<1x128xi1>
    %c8_i32 = arith.constant 8 : i32
    %30 = vector.broadcast %c8_i32 : i32 to vector<1x128xi32>
    %31 = arith.cmpi slt, %10, %30 : vector<1x128xi32>
    %32 = arith.andi %29, %31 : vector<1x128xi1>
    %c0_i32_8 = arith.constant 0 : i32
    %33 = vector.broadcast %c0_i32_8 : i32 to vector<1x128xi32>
    %34 = arith.cmpi sge, %17, %33 : vector<1x128xi32>
    %35 = arith.andi %32, %34 : vector<1x128xi1>
    %c8_i32_9 = arith.constant 8 : i32
    %36 = vector.broadcast %c8_i32_9 : i32 to vector<1x128xi32>
    %37 = arith.cmpi slt, %17, %36 : vector<1x128xi32>
    %38 = arith.andi %35, %37 : vector<1x128xi1>
    %c0_i32_10 = arith.constant 0 : i32
    %39 = vector.broadcast %c0_i32_10 : i32 to vector<1x128xi32>
    %40 = arith.cmpi sge, %24, %39 : vector<1x128xi32>
    %41 = arith.andi %38, %40 : vector<1x128xi1>
    %c4_i32 = arith.constant 4 : i32
    %42 = vector.broadcast %c4_i32 : i32 to vector<1x128xi32>
    %43 = arith.cmpi slt, %24, %42 : vector<1x128xi32>
    %44 = arith.andi %41, %43 : vector<1x128xi1>
    %c64_i32 = arith.constant 64 : i32
    %45 = vector.broadcast %c64_i32 : i32 to vector<1x128xi32>
    %46 = arith.muli %24, %45 : vector<1x128xi32>
    %c8_i32_11 = arith.constant 8 : i32
    %47 = vector.broadcast %c8_i32_11 : i32 to vector<1x128xi32>
    %48 = arith.muli %17, %47 : vector<1x128xi32>
    %49 = arith.addi %46, %48 : vector<1x128xi32>
    %50 = arith.addi %49, %10 : vector<1x128xi32>
    %c-1_i32 = arith.constant -1 : i32
    %51 = vector.broadcast %c-1_i32 : i32 to vector<1x128xi32>
    %52 = arith.select %44, %50, %51 : vector<1x128xi1>, vector<1x128xi32>
    %c0_12 = arith.constant 0 : index
    %c0_13 = arith.constant 0 : index
    %53 = vector.load %arg2[%c0_12, %c0_13] : memref<1x128xi32, #tpu.memory_space<vmem>>, vector<1x128xi32>
    tpu.vector_store %arg2[%c0_12, %c0_13], %52 {strides = array<i32>} : memref<1x128xi32, #tpu.memory_space<vmem>>, vector<1x128xi32>,
    return
  }
  func.func @transform_0(%arg0: i32) -> (i32, i32) {
    %c0_i32 = arith.constant 0 : i32
    %c0_i32_0 = arith.constant 0 : i32
    return %c0_i32, %arg0 : i32, i32
  }
  func.func @transform_1(%arg0: i32) -> (i32, i32) {
    %c0_i32 = arith.constant 0 : i32
    %c0_i32_0 = arith.constant 0 : i32
    return %c0_i32, %arg0 : i32, i32
  }
}

</mosaic_0001>

<bundles_post_ra>
// kernel: tpu_custom_call.1
= control target key start
LH: loop header
LB: loop body
LE: loop exit
PB: predicated region body
PF: predicated region fallthrough
CT: control target
= control target key end

     0   :  { %6 = vsyncpa [#allocation3], 0  ;;  %s165_s0 = inlined_call_operand.hbm [shape: f32[3,128], index: 0, kind: input, shape index: {}]   ;;  %s166_s1 = inlined_call_operand.hbm [shape: s32[1,128], index: 1, kind: output, shape index: {}]  }
   0x1   :  { %7 = vsyncpa [#allocation4], 0  ;;  %s13_s8 = sshll.u32 %s165_s0, 4  ;;  %s146_s9 = smov [#allocation2]   ;;  %s14_s8 = int_to_ptr.hbm [resolvable:$true] %s13_s8 }
   0x2   :  { %s15_s10 = sshll.u32 %s146_s9, 4  ;;  %s16_s10 = int_to_ptr.vmem [resolvable:$true] %s15_s10 }
   0x3   :  { %18 = dma.hbm_to_vmem [thread:$0]  %s14_s8, 64, %s16_s10, [#allocation3]  }
   0x4   :  { %142 = dma.done.wait [#allocation3], 64  }
   0x5   :  { %143 = vsyncadd [#allocation3], 4294967232  ;;  %v147_v0 = vmov 0.5   ;;  %v23_v5 = vlaneseq  ;;  %v28_v6 = vld [vmem:[#allocation2] sm:$0x1]  ;;  %s148_s0 = smov [#allocation5]  }
   0x6   :  { %92 = vrcp.f32 %v147_v0  ;;  %v39_v8 = vld [vmem:[#allocation2 + $0x1] sm:$0x1]  ;;  %v43_v9 = vld [vmem:[#allocation2 + $0x2] sm:$0x1]  ;;  %s71_s11 = sshll.u32 %s148_s0, 4  ;;  %s73_s14 = sshll.u32 %s166_s1, 4  ;;  %s72_s11 = int_to_ptr.vmem [resolvable:$true] %s71_s11  ;;  %s74_s14 = int_to_ptr.hbm [resolvable:$true] %s73_s14 }
   0x7   :  { %v24_v11 = vand.u32 127, %v23_v5 }
   0x9   :  { %vm47_vm1 = vcmp.lt.s32.totalorder %v24_v11, 100 }
   0xc   :  { %v93_v1 = vpop.eup %92 }
   0xd   :  { %v30_v2 = vmul.f32 0.5, %v93_v1  ;;  %vm34_vm0 = vweird.f32 %v93_v1 }
   0xf   :  { %v31_v3 = vsub.f32 1.0, %v30_v2 }
  0x11   :  { %v32_v4 = vmul.f32 %v93_v1, %v31_v3 }
  0x13   :  { %v33_v7 = vadd.f32 %v93_v1, %v32_v4 }
  0x15   :  { %v35_v10 = vsel %vm34_vm0, %v93_v1, %v33_v7 }
  0x16   :  { %v36_v12 = vmul.f32 %v35_v10, %v28_v6  ;;  %v40_v13 = vmul.f32 %v39_v8, %v35_v10  ;;  %v44_v14 = vmul.f32 %v43_v9, %v35_v10 }
  0x18   :  { %v37_v15 = vfloor.f32 %v36_v12  ;;  %v41_v16 = vfloor.f32 %v40_v13  ;;  %v45_v17 = vfloor.f32 %v44_v14 }
  0x1a   :  { %v84_v18 = vcvt.f32.s32 %v37_v15  ;;  %v86_v19 = vcvt.f32.s32 %v41_v16  ;;  %v88_v20 = vcvt.f32.s32 %v45_v17 }
  0x1c   :  { %vm48_vm2 = vcmp.ge.s32.totalorder %v84_v18, 0  ;;  %vm50_vm3 = vcmp.lt.s32.totalorder %v84_v18, 8  ;;  %vm52_vm4 = vcmp.ge.s32.totalorder %v86_v19, 0  ;;  %vm54_vm6 = vcmp.lt.s32.totalorder %v86_v19, 8 }
  0x1d   :  { %vm49_vm5 = vmand %vm47_vm1, %vm48_vm2  ;;  %v60_v21 = vmul.u32 64, %v88_v20  ;;  %v61_v22 = vmul.u32 8, %v86_v19  ;;  %vm56_vm8 = vcmp.ge.s32.totalorder %v88_v20, 0  ;;  %vm58_vm10 = vcmp.lt.s32.totalorder %v88_v20, 4 }
  0x1e   :  { %vm51_vm7 = vmand %vm49_vm5, %vm50_vm3 }
  0x1f   :  { %vm53_vm9 = vmand %vm51_vm7, %vm52_vm4  ;;  %v62_v23 = vadd.s32 %v61_v22, %v60_v21 }
  0x20   :  { %vm55_vm11 = vmand %vm53_vm9, %vm54_vm6 }
  0x21   :  { %vm57_vm12 = vmand %vm55_vm11, %vm56_vm8  ;;  %v63_v24 = vadd.s32 %v84_v18, %v62_v23 }
  0x22   :  { %vm59_vm13 = vmand %vm57_vm12, %vm58_vm10 }
  0x23   :  { %v64_v25 = vsel %vm59_vm13, %v63_v24, 4294967295 }
  0x24   :  { %65 = vst [vmem:[#allocation5] sm:$0x1] %v64_v25 }
  0x25   :  { %76 = dma.vmem_to_hbm [thread:$0]  %s72_s11, 16, %s74_s14, [#allocation4]  }
  0x26   :  { %144 = dma.done.wait [#allocation4], 16  }
  0x27   :  { %145 = vsyncadd [#allocation4], 4294967280 }
  0x28   :  { %81 = vsyncpa [#allocation3], 1 }
  0x29   :  { %82 = vsyncpa [#allocation4], 1 }

</bundles_post_ra>
